<compile_context>
chip_gen: v7x
topology: tpu7x:2x2x1
jax: 0.10.0
libtpu: 0.0.40
codegen_flags: <defaults>
</compile_context>

<pallas_src>
import functools

import jax
import jax.numpy as jnp
from jax.experimental import pallas as pl
from jax.experimental.pallas import tpu as pltpu


def _se_kernel(x_ref, w1_ref, b1_ref, w2_ref, b2_ref, o_ref, acc_ref, *,
               inv_hw, hw, hw_tile, needs_mask):
    # x_ref:  (bn, C, hw_tile) streamed per grid step
    # w1_ref: (C, mid_p) f32   b1_ref: (1, mid_p) f32
    # w2_ref: (mid_p, out_p)   b2_ref: (1, out_p)
    # o_ref:  (1, bn, out_p)   acc_ref: (bn, C) f32 spatial-sum accumulator
    h = pl.program_id(1)

    @pl.when(h == 0)
    def _():
        acc_ref[...] = jnp.zeros_like(acc_ref)

    x = x_ref[...]
    if needs_mask:
        # The last HW chunk overruns the true H*W extent (no wrapper-side pad);
        # lanes past the array bound hold unspecified data -> select 0 for them.
        lane = jax.lax.broadcasted_iota(jnp.int32, x.shape, 2)
        x = jnp.where(lane < (hw - h * hw_tile), x, jnp.zeros_like(x))

    # Partial spatial sum for this chunk, widened to f32 by the reduction
    # (bf16 inputs stay bf16 in HBM/VMEM; no full-tile f32 copy).
    acc_ref[...] += jnp.sum(x, axis=-1, dtype=jnp.float32)

    @pl.when(h == pl.num_programs(1) - 1)
    def _():
        # AdaptiveAvgPool2d(1): divide the accumulated sum by the true H*W.
        pooled = acc_ref[...] * inv_hw                               # (bn, C) f32

        # squeeze: 1x1 conv (C -> mid) + ReLU (weights already f32).
        y = jnp.dot(pooled, w1_ref[...], preferred_element_type=jnp.float32)
        y = jnp.maximum(y + b1_ref[...], 0.0)

        # excite: 1x1 conv (mid -> out) + Hardsigmoid = clip(x/6 + 0.5, 0, 1).
        z = jnp.dot(y, w2_ref[...], preferred_element_type=jnp.float32)
        z = z + b2_ref[...]
        z = jnp.clip(z * (1.0 / 6.0) + 0.5, 0.0, 1.0)

        # Output cast to x.dtype (bf16 input -> bf16 excitation, documented).
        # Leading unit dim only -> no relayout of the (bn, out_p) tile.
        o_ref[...] = z[None, :, :].astype(o_ref.dtype)


def _round_up(x: int, m: int) -> int:
    return ((x + m - 1) // m) * m


def _device_kind() -> str:
    try:
        return jax.devices()[0].device_kind.lower()
    except Exception:
        return ""


def _default_block_bytes() -> int:
    # Per-generation single-buffer stream-block budget (pipeline double-buffers):
    # v5e (~0.8 TB/s) is near roofline at 2 MiB, v6e wants ~4 MiB, v7x (~3.2 TB/s)
    # needs ~8 MiB to amortize the ~0.35us per-grid-step overhead.
    kind = _device_kind()
    if "v5p" in kind or "v4" in kind:
        return 4 * 1024 * 1024
    if "v5" in kind:                      # v5e / v5 lite
        return 2 * 1024 * 1024
    if "v6" in kind:
        return 4 * 1024 * 1024
    if "7" in kind:                       # v7x
        return 8 * 1024 * 1024
    return 4 * 1024 * 1024


def _two_tensorcore_chip() -> bool:
    # Chips where one Pallas program spans 2 TensorCores; make sure the
    # "parallel" batch axis gets >= 2 blocks so both cores do work.
    kind = _device_kind()
    return ("v4" in kind) or ("v5p" in kind) or ("7" in kind)


def _choose_bn(n: int, c_pad: int, itemsize: int, budget: int,
               want_two_blocks: bool) -> int:
    cap = n
    if want_two_blocks and n >= 2:
        cap = max(1, n // 2)
    divisors = [d for d in range(cap, 0, -1) if n % d == 0]
    # Largest batch block whose (sublane-padded) bytes still allow a reasonably
    # large lane-dense HW tile; shrink bn (not hw_tile) when C is large so the
    # contiguous DMA rows stay >= ~2 KiB and VMEM can never overflow.
    for min_tile in (512, 256, 128):
        for d in divisors:
            if d * c_pad * min_tile * itemsize <= budget:
                return d
    return 1


def _choose_hw_tile(hw: int, bn: int, c_pad: int, itemsize: int, budget: int) -> int:
    max_tile = max(128, (budget // (bn * c_pad * itemsize)) // 128 * 128)
    hw_ceil = _round_up(hw, 128)
    if hw_ceil <= max_tile:
        return hw_ceil                      # single chunk per batch block
    if hw % 128 == 0:
        # Prefer a divisor of hw (>= max_tile/2) so there is no ragged tail at all.
        t = max_tile
        while t >= max(128, max_tile // 2):
            if hw % t == 0:
                return t
            t -= 128
    return max_tile                          # ragged tail handled by in-kernel mask


def squeeze_excite(x, w1, b1, w2, b2, *, block_bytes=None):
    """x: (N, C, H, W) NCHW.  w1: (mid, C, 1, 1), b1: (mid,),
    w2: (out, mid, 1, 1), b2: (out,).  Returns (N, out, 1, 1) excitation."""
    N, C, H, W = x.shape
    mid = w1.shape[0]
    out_c = w2.shape[0]
    hw = H * W

    if block_bytes is None:
        block_bytes = _default_block_bytes()

    itemsize = jnp.dtype(x.dtype).itemsize
    sublane_pack = 8 * (4 // itemsize)       # 8 for f32, 16 for bf16
    c_pad = _round_up(C, sublane_pack)       # sublane padding of the streamed tile
    # TODO(synk): when C < sublane_pack (e.g. C=4 f32) the streamed tile still
    # carries up to 2-4x sublane padding in VMEM; collapsing (N, C) into one row
    # dim would remove it but needs an in-kernel relayout of the pooled vector.

    bn = _choose_bn(N, c_pad, itemsize, block_bytes, _two_tensorcore_chip())
    # TODO(synk): N == 1 on v7x leaves one TensorCore idle (needs a cross-core
    # partial-sum combine to split the HW axis).
    hw_tile = _choose_hw_tile(hw, bn, c_pad, itemsize, block_bytes)
    n_hw = pl.cdiv(hw, hw_tile)
    needs_mask = (hw % hw_tile) != 0

    # Stream x from HBM exactly once: flatten spatial dims (free reshape), no pad.
    x_flat = x.reshape(N, C, hw)

    # 1x1 convs as (in, out) matmuls; pad mid/out to 128 lanes so the MXU operands
    # and the output store are lane-dense (padding columns are exactly 0, so they
    # contribute 0 through ReLU; sliced off below).
    mid_p = _round_up(mid, 128)
    out_p = _round_up(out_c, 128)
    f32 = jnp.float32
    w1_t = jnp.zeros((C, mid_p), f32).at[:, :mid].set(w1.reshape(mid, C).T.astype(f32))
    b1_r = jnp.zeros((1, mid_p), f32).at[:, :mid].set(b1.astype(f32))
    w2_t = jnp.zeros((mid_p, out_p), f32).at[:mid, :out_c].set(
        w2.reshape(out_c, mid).T.astype(f32))
    b2_r = jnp.zeros((1, out_p), f32).at[:, :out_c].set(b2.astype(f32))

    # VMEM footprint: double-buffered stream block + resident params + output +
    # accumulator + headroom; capped at 64 MiB (v7x physical VMEM).
    block_b = bn * c_pad * hw_tile * itemsize
    param_b = 4 * (_round_up(C, 8) * mid_p + 8 * mid_p
                   + _round_up(mid_p, 8) * out_p + 8 * out_p)
    out_b = _round_up(bn, 8) * out_p * itemsize
    acc_b = _round_up(bn, 8) * _round_up(C, 128) * 4
    vmem_limit = 2 * block_b + 2 * param_b + 2 * out_b + acc_b + (2 << 20)
    vmem_limit = int(min(64 * 1024 * 1024, max(16 * 1024 * 1024, vmem_limit)))

    kernel = functools.partial(
        _se_kernel, inv_hw=1.0 / float(hw), hw=hw, hw_tile=hw_tile,
        needs_mask=needs_mask)

    out = pl.pallas_call(
        kernel,
        out_shape=jax.ShapeDtypeStruct((N // bn, bn, out_p), x.dtype),
        grid_spec=pltpu.PrefetchScalarGridSpec(
            num_scalar_prefetch=0,
            grid=(N // bn, n_hw),
            in_specs=[
                # streamed input tiles (double-buffered by the pipeline)
                pl.BlockSpec((bn, C, hw_tile), lambda n, h: (n, 0, h)),
                # tiny VMEM-resident parameters (same block every grid step)
                pl.BlockSpec((C, mid_p), lambda n, h: (0, 0)),
                pl.BlockSpec((1, mid_p), lambda n, h: (0, 0)),
                pl.BlockSpec((mid_p, out_p), lambda n, h: (0, 0)),
                pl.BlockSpec((1, out_p), lambda n, h: (0, 0)),
            ],
            # block's last two dims equal the full array dims -> always legal,
            # lane-dense store regardless of bn
            out_specs=pl.BlockSpec((1, bn, out_p), lambda n, h: (n, 0, 0)),
            scratch_shapes=[pltpu.VMEM((bn, C), jnp.float32)],
        ),
        compiler_params=pltpu.CompilerParams(
            dimension_semantics=("parallel", "arbitrary"),
            vmem_limit_bytes=vmem_limit,
        ),
    )(x_flat, w1_t, b1_r, w2_t, b2_r)

    return out.reshape(N, out_p)[:, :out_c].reshape(N, out_c, 1, 1)


if __name__ == "__main__":
    # Module config: in_channels=4, squeeze_ratio=2.0, out_channels=None (=4),
    # global_pool=True, pool_type='avg', ReLU + Hardsigmoid activations.
    in_channels = 4
    squeeze_ratio = 2.0
    out_channels = in_channels
    mid_channels = int(max(1, in_channels // squeeze_ratio))   # = 2

    key = jax.random.PRNGKey(0)
    kx1, kx2, k1, kb1, k2, kb2 = jax.random.split(key, 6)

    w1 = jax.random.normal(k1, (mid_channels, in_channels, 1, 1), jnp.float32) * 0.5
    b1 = jax.random.normal(kb1, (mid_channels,), jnp.float32) * 0.1
    w2 = jax.random.normal(k2, (out_channels, mid_channels, 1, 1), jnp.float32) * 0.5
    b2 = jax.random.normal(kb2, (out_channels,), jnp.float32) * 0.1

    def reference(xx):
        pooled = jnp.mean(xx, axis=(2, 3))
        y = jnp.maximum(pooled @ w1.reshape(mid_channels, in_channels).T + b1, 0.0)
        z = y @ w2.reshape(out_channels, mid_channels).T + b2
        return jnp.clip(z / 6.0 + 0.5, 0.0, 1.0).reshape(xx.shape[0], out_channels, 1, 1)

    # Case 1: H*W = 256 is a 128-multiple and fits one chunk -> no masking.
    x1 = jax.random.normal(kx1, (2, in_channels, 16, 16), dtype=jnp.float32)
    out1 = squeeze_excite(x1, w1, b1, w2, b2)
    jax.block_until_ready(out1)
    assert out1.shape == (2, out_channels, 1, 1)
    assert jnp.allclose(out1, reference(x1), atol=1e-5, rtol=1e-5)

    # Case 2: tiny block budget forces multiple HW chunks, and H*W = 225 is not a
    # tile multiple -> exercises the accumulate-then-finalize path and the
    # in-kernel ragged-tail mask (no wrapper-side jnp.pad / extra HBM copy).
    x2 = jax.random.normal(kx2, (2, in_channels, 15, 15), dtype=jnp.float32)
    out2 = squeeze_excite(x2, w1, b1, w2, b2, block_bytes=4096)
    jax.block_until_ready(out2)
    assert out2.shape == (2, out_channels, 1, 1)
    assert jnp.allclose(out2, reference(x2), atol=1e-5, rtol=1e-5)

    print("KERNEL_OK")
</pallas_src>

<mosaic_0001>
module attributes {stable_mosaic.version = 11 : i64} {
  func.func @_se_kernel(%arg0: i32, %arg1: i32, %arg2: memref<2x4x256xf32, #tpu.memory_space<vmem>>, %arg3: memref<4x128xf32, #tpu.memory_space<vmem>>, %arg4: memref<1x128xf32, #tpu.memory_space<vmem>>, %arg5: memref<128x128xf32, #tpu.memory_space<vmem>>, %arg6: memref<1x128xf32, #tpu.memory_space<vmem>>, %arg7: memref<1x2x128xf32, #tpu.memory_space<vmem>>, %arg8: memref<2x4xf32, #tpu.memory_space<vmem>>) attributes {dimension_semantics = [#tpu.dimension_semantics<parallel>, #tpu.dimension_semantics<arbitrary>], iteration_bounds = array<i64: 1, 1>, scalar_prefetch = 0 : i64, scratch_operands = 1 : i64, tpu.core_type = #tpu.core_type<tc>, window_params = [{transform_indices = @transform_0, window_bounds = array<i64: 2, 4, 256>}, {pipeline_mode = #tpu.pipeline_mode<synchronous>, transform_indices = @transform_1, window_bounds = array<i64: 4, 128>}, {pipeline_mode = #tpu.pipeline_mode<synchronous>, transform_indices = @transform_2, window_bounds = array<i64: 1, 128>}, {pipeline_mode = #tpu.pipeline_mode<synchronous>, transform_indices = @transform_3, window_bounds = array<i64: 128, 128>}, {pipeline_mode = #tpu.pipeline_mode<synchronous>, transform_indices = @transform_4, window_bounds = array<i64: 1, 128>}, {transform_indices = @transform_5, window_bounds = array<i64: 1, 2, 128>}]} {
    %c0_i32 = arith.constant 0 : i32
    %0 = arith.cmpi eq, %arg1, %c0_i32 : i32
    %1 = arith.extui %0 : i1 to i32
    %c0_i32_0 = arith.constant 0 : i32
    %2 = arith.cmpi ne, %1, %c0_i32_0 : i32
    scf.if %2 {
      %cst_9 = arith.constant 0.000000e+00 : f32
      %11 = vector.broadcast %cst_9 : f32 to vector<2x4xf32>
      %c0_10 = arith.constant 0 : index
      %c0_11 = arith.constant 0 : index
      %12 = vector.load %arg8[%c0_10, %c0_11] : memref<2x4xf32, #tpu.memory_space<vmem>>, vector<2x4xf32>
      tpu.vector_store %arg8[%c0_10, %c0_11], %11 {strides = array<i32>} : memref<2x4xf32, #tpu.memory_space<vmem>>, vector<2x4xf32>,
    } else {
    }
    %c0 = arith.constant 0 : index
    %c0_1 = arith.constant 0 : index
    %c0_2 = arith.constant 0 : index
    %3 = vector.load %arg2[%c0, %c0_1, %c0_2] : memref<2x4x256xf32, #tpu.memory_space<vmem>>, vector<2x4x256xf32>
    %c0_3 = arith.constant 0 : index
    %c0_4 = arith.constant 0 : index
    %4 = vector.load %arg8[%c0_3, %c0_4] : memref<2x4xf32, #tpu.memory_space<vmem>>, vector<2x4xf32>
    %cst = arith.constant dense<0.000000e+00> : vector<2x4xf32>
    %5 = vector.multi_reduction <add>, %3, %cst [2] : vector<2x4x256xf32> to vector<2x4xf32>
    %6 = arith.addf %4, %5 : vector<2x4xf32>
    %c0_5 = arith.constant 0 : index
    %c0_6 = arith.constant 0 : index
    %7 = vector.load %arg8[%c0_5, %c0_6] : memref<2x4xf32, #tpu.memory_space<vmem>>, vector<2x4xf32>
    tpu.vector_store %arg8[%c0_5, %c0_6], %6 {strides = array<i32>} : memref<2x4xf32, #tpu.memory_space<vmem>>, vector<2x4xf32>,
    %c0_i32_7 = arith.constant 0 : i32
    %8 = arith.cmpi eq, %arg1, %c0_i32_7 : i32
    %9 = arith.extui %8 : i1 to i32
    %c0_i32_8 = arith.constant 0 : i32
    %10 = arith.cmpi ne, %9, %c0_i32_8 : i32
    scf.if %10 {
      %c0_9 = arith.constant 0 : index
      %c0_10 = arith.constant 0 : index
      %11 = vector.load %arg8[%c0_9, %c0_10] : memref<2x4xf32, #tpu.memory_space<vmem>>, vector<2x4xf32>
      %cst_11 = arith.constant 3.906250e-03 : f32
      %12 = vector.broadcast %cst_11 : f32 to vector<2x4xf32>
      %13 = arith.mulf %11, %12 : vector<2x4xf32>
      %c0_12 = arith.constant 0 : index
      %c0_13 = arith.constant 0 : index
      %14 = vector.load %arg3[%c0_12, %c0_13] : memref<4x128xf32, #tpu.memory_space<vmem>>, vector<4x128xf32>
      %cst_14 = arith.constant dense<0.000000e+00> : vector<2x128xf32>
      %15 = tpu.matmul %13, %14, %cst_14 {dimension_numbers = #tpu.dot_dimension_numbers<[1], [0], [0], [1], [0, 0, 1, 1], [], []>} : vector<2x4xf32>, vector<4x128xf32>, vector<2x128xf32> -> vector<2x128xf32>
      %c0_15 = arith.constant 0 : index
      %c0_16 = arith.constant 0 : index
      %16 = vector.load %arg4[%c0_15, %c0_16] : memref<1x128xf32, #tpu.memory_space<vmem>>, vector<1x128xf32>
      %17 = vector.broadcast %16 : vector<1x128xf32> to vector<2x128xf32>
      %18 = arith.addf %15, %17 : vector<2x128xf32>
      %cst_17 = arith.constant 0.000000e+00 : f32
      %19 = vector.broadcast %cst_17 : f32 to vector<2x128xf32>
      %20 = arith.maximumf %18, %19 : vector<2x128xf32>
      %c0_18 = arith.constant 0 : index
      %c0_19 = arith.constant 0 : index
      %21 = vector.load %arg5[%c0_18, %c0_19] : memref<128x128xf32, #tpu.memory_space<vmem>>, vector<128x128xf32>
      %cst_20 = arith.constant dense<0.000000e+00> : vector<2x128xf32>
      %22 = tpu.matmul %20, %21, %cst_20 {dimension_numbers = #tpu.dot_dimension_numbers<[1], [0], [0], [1], [0, 0, 1, 1], [], []>} : vector<2x128xf32>, vector<128x128xf32>, vector<2x128xf32> -> vector<2x128xf32>
      %c0_21 = arith.constant 0 : index
      %c0_22 = arith.constant 0 : index
      %23 = vector.load %arg6[%c0_21, %c0_22] : memref<1x128xf32, #tpu.memory_space<vmem>>, vector<1x128xf32>
      %24 = vector.broadcast %23 : vector<1x128xf32> to vector<2x128xf32>
      %25 = arith.addf %22, %24 : vector<2x128xf32>
      %cst_23 = arith.constant 0.166666672 : f32
      %26 = vector.broadcast %cst_23 : f32 to vector<2x128xf32>
      %27 = arith.mulf %25, %26 : vector<2x128xf32>
      %cst_24 = arith.constant 5.000000e-01 : f32
      %28 = vector.broadcast %cst_24 : f32 to vector<2x128xf32>
      %29 = arith.addf %27, %28 : vector<2x128xf32>
      %cst_25 = arith.constant 0.000000e+00 : f32
      %cst_26 = arith.constant 1.000000e+00 : f32
      %30 = vector.broadcast %cst_25 : f32 to vector<2x128xf32>
      %31 = arith.maximumf %30, %29 : vector<2x128xf32>
      %32 = vector.broadcast %cst_26 : f32 to vector<2x128xf32>
      %33 = arith.minimumf %32, %31 : vector<2x128xf32>
      %34 = vector.shape_cast %33 : vector<2x128xf32> to vector<1x2x128xf32>
      %c0_27 = arith.constant 0 : index
      %c0_28 = arith.constant 0 : index
      %c0_29 = arith.constant 0 : index
      %35 = vector.load %arg7[%c0_27, %c0_28, %c0_29] : memref<1x2x128xf32, #tpu.memory_space<vmem>>, vector<1x2x128xf32>
      tpu.vector_store %arg7[%c0_27, %c0_28, %c0_29], %34 {strides = array<i32>} : memref<1x2x128xf32, #tpu.memory_space<vmem>>, vector<1x2x128xf32>,
    } else {
    }
    return
  }
  func.func @transform_0(%arg0: i32, %arg1: i32) -> (i32, i32, i32) {
    %c0_i32 = arith.constant 0 : i32
    %c0_i32_0 = arith.constant 0 : i32
    return %arg0, %c0_i32, %arg1 : i32, i32, i32
  }
  func.func @transform_1(%arg0: i32, %arg1: i32) -> (i32, i32) {
    %c0_i32 = arith.constant 0 : i32
    %c0_i32_0 = arith.constant 0 : i32
    %c0_i32_1 = arith.constant 0 : i32
    return %c0_i32, %c0_i32_0 : i32, i32
  }
  func.func @transform_2(%arg0: i32, %arg1: i32) -> (i32, i32) {
    %c0_i32 = arith.constant 0 : i32
    %c0_i32_0 = arith.constant 0 : i32
    %c0_i32_1 = arith.constant 0 : i32
    return %c0_i32, %c0_i32_0 : i32, i32
  }
  func.func @transform_3(%arg0: i32, %arg1: i32) -> (i32, i32) {
    %c0_i32 = arith.constant 0 : i32
    %c0_i32_0 = arith.constant 0 : i32
    %c0_i32_1 = arith.constant 0 : i32
    return %c0_i32, %c0_i32_0 : i32, i32
  }
  func.func @transform_4(%arg0: i32, %arg1: i32) -> (i32, i32) {
    %c0_i32 = arith.constant 0 : i32
    %c0_i32_0 = arith.constant 0 : i32
    %c0_i32_1 = arith.constant 0 : i32
    return %c0_i32, %c0_i32_0 : i32, i32
  }
  func.func @transform_5(%arg0: i32, %arg1: i32) -> (i32, i32, i32) {
    %c0_i32 = arith.constant 0 : i32
    %c0_i32_0 = arith.constant 0 : i32
    %c0_i32_1 = arith.constant 0 : i32
    return %arg0, %c0_i32, %c0_i32_0 : i32, i32, i32
  }
}

</mosaic_0001>

<bundles_post_ra>
// kernel: tpu_custom_call.1
= control target key start
LH: loop header
LB: loop body
LE: loop exit
PB: predicated region body
PF: predicated region fallthrough
CT: control target
= control target key end

     0   :  { %10 = vsyncpa [#allocation4], 0  ;;  %s608_s0 = inlined_call_operand.hbm [shape: f32[2,4,256], index: 0, kind: input, shape index: {}]   ;;  %s609_s1 = inlined_call_operand.hbm [shape: f32[4,128], index: 1, kind: input, shape index: {}]   ;;  %s610_s2 = inlined_call_operand.vmem [shape: f32[1,128], index: 2, kind: input, shape index: {}]   ;;  %s611_s3 = inlined_call_operand.hbm [shape: f32[128,128], index: 3, kind: input, shape index: {}]   ;;  %s612_s4 = inlined_call_operand.vmem [shape: f32[1,128], index: 4, kind: input, shape index: {}]   ;;  %s613_s5 = inlined_call_operand.hbm [shape: f32[1,2,128], index: 5, kind: output, shape index: {}]  }
   0x1   :  { %11 = vsyncpa [#allocation7], 0 }
   0x2   :  { %12 = vsyncpa [#allocation5], 0  ;;  %s501_s18 = smov [#allocation6]   ;;  %s502_s20 = smov [#allocation3]  }
   0x3   :  { %s31_s19 = sshll.u32 %s501_s18, 4  ;;  %s18_s21 = sshll.u32 %s502_s20, 4  ;;  %s32_s19 = int_to_ptr.vmem [resolvable:$true] %s31_s19  ;;  %s540_s21 = int_to_ptr.vmem [resolvable:$true] %s18_s21 }
   0x4   :  { %s407_s24 = scalar_lea.hbm %s609_s1, 64 }
   0x5   :  { %p408_p0 = scmp.ne.s32.totalorder %s609_s1, %s407_s24  ;;  %p411_p1 = scmp.lt.u32.totalorder %s407_s24, %s609_s1 }
   0x7   :  { %p413_p2 = pnand %p411_p1, %p408_p0 }
   0x9   :  { %416 = shalt.err (!%p413_p2)
}
   0xa   :  { %s417_s29 = scalar_lea.vmem %s32_s19, 64  ;;  %p422_p4 = scmp.lt.s32.totalorder %s32_s19, %s32_s19 }
   0xb   :  { %p418_p3 = scmp.ne.s32.totalorder %s32_s19, %s417_s29  ;;  %p423_p5 = scmp.lt.s32.totalorder %s417_s29, %s417_s29 }
   0xd   :  { %p424_p6 = por %p423_p5, %p422_p4 }
   0xf   :  { %p425_p7 = pnand %p424_p6, %p418_p3 }
  0x11   :  { %428 = shalt.err (!%p425_p7)
}
  0x12   :  { %34 = dma.hbm_to_vmem [thread:$0]  %s609_s1, 64, %s32_s19, [#allocation7]  }
  0x13   :  { %s429_s9 = scalar_lea.hbm %s608_s0, 256 }
  0x14   :  { %p430_p8 = scmp.ne.s32.totalorder %s608_s0, %s429_s9  ;;  %p433_p9 = scmp.lt.u32.totalorder %s429_s9, %s608_s0 }
  0x16   :  { %p435_p10 = pnand %p433_p9, %p430_p8 }
  0x18   :  { %438 = shalt.err (!%p435_p10)
}
  0x19   :  { %s439_s14 = scalar_lea.vmem %s540_s21, 256  ;;  %p444_p12 = scmp.lt.s32.totalorder %s540_s21, %s540_s21 }
  0x1a   :  { %p440_p11 = scmp.ne.s32.totalorder %s540_s21, %s439_s14  ;;  %p445_p13 = scmp.lt.s32.totalorder %s439_s14, %s439_s14 }
  0x1c   :  { %p446_p0 = por %p445_p13, %p444_p12 }
  0x1e   :  { %p447_p1 = pnand %p446_p0, %p440_p11 }
  0x20   :  { %450 = shalt.err (!%p447_p1)
}
  0x21   :  { %s503_s1 = smov 128   ;;  %s504_s15 = smov 8  }
  0x22   :  { %24 = dma.hbm_to_vmem [thread:$0]  %s608_s0, 256, %s540_s21, [#allocation4], %s503_s1, %s503_s1, %s504_s15  }
  0x23   :  { %s505_s18 = smov [#allocation8]   ;;  %s451_s23 = scalar_lea.hbm %s611_s3, 2048 }
  0x24   :  { %s42_s19 = sshll.u32 %s505_s18, 4  ;;  %p452_p2 = scmp.ne.s32.totalorder %s611_s3, %s451_s23  ;;  %s43_s19 = int_to_ptr.vmem [resolvable:$true] %s42_s19 }
  0x25   :  { %p455_p3 = scmp.lt.u32.totalorder %s451_s23, %s611_s3 }
  0x27   :  { %p457_p4 = pnand %p455_p3, %p452_p2 }
  0x29   :  { %460 = shalt.err (!%p457_p4)
}
  0x2a   :  { %s461_s28 = scalar_lea.vmem %s43_s19, 2048  ;;  %p466_p6 = scmp.lt.s32.totalorder %s43_s19, %s43_s19 }
  0x2b   :  { %p462_p5 = scmp.ne.s32.totalorder %s43_s19, %s461_s28  ;;  %p467_p7 = scmp.lt.s32.totalorder %s461_s28, %s461_s28 }
  0x2d   :  { %p468_p8 = por %p467_p7, %p466_p6 }
  0x2f   :  { %p469_p9 = pnand %p468_p8, %p462_p5 }
  0x31   :  { %472 = shalt.err (!%p469_p9)
}
  0x32   :  { %48 = dma.hbm_to_vmem [thread:$0]  %s611_s3, 2048, %s43_s19, [#allocation7], %s503_s1, %s503_s1, %s504_s15  }
  0x33   :  { %495 = dma.done.wait [#allocation4], 256  }
  0x34   :  { %496 = vsyncadd [#allocation4], 4294967040 }
  0x35   :  { %497 = dma.done.wait [#allocation7], 2112  }
  0x36   :  { %498 = vsyncadd [#allocation7], 4294965184  ;;  %vm75_vm0 = vcmask 1043456   ;;  %v66_v0 = vld [vmem:[#allocation3] sm:$0xff]  ;;  %v67_v1 = vld [vmem:[#allocation3 + $0x8] sm:$0xff]  ;;  %vm64_vm1 = vcmask 25600   ;;  %v88_v34 = vlaneseq }
  0x37   :  { %v71_v2 = vcombine.high %v66_v0, %v66_v0  ;;  %v76_v3 = vsel %vm75_vm0, %v66_v0, 0.0  ;;  %v72_v4 = vcombine.high %v67_v1, %v67_v1  ;;  %v81_v6 = vsel %vm75_vm0, %v67_v1, 0.0  ;;  %v109_v11 = vld [vmem:[#allocation6] sm:$0xf]  ;;  %v195_v12 = vld [vmem:[#allocation8] sm:$0xff]  ;;  %v196_v13 = vld [vmem:[#allocation8 + $0x8] sm:$0xff] }
  0x38   :  { %v506_v10 = vmov 0.0   ;;  %vm507_vm2 = vmmov 0   ;;  %v197_v14 = vld [vmem:[#allocation8 + $0x10] sm:$0xff]  ;;  %v508_v15 = vmov 0.0|0.0   ;;  %v373_v16 = vpack.c.bf16 %v196_v13, %v195_v12  ;;  %v198_v17 = vld [vmem:[#allocation8 + $0x18] sm:$0xff]  ;;  %v199_v19 = vld [vmem:[#allocation8 + $0x20] sm:$0xff] }
  0x39   :  { %v77_v5 = vsel %vm75_vm0, %v71_v2, 0.0  ;;  %v82_v7 = vsel %vm75_vm0, %v72_v4, 0.0  ;;  %65 = vst.msk [vmem:[#allocation2] sm:$0x3] %vm64_vm1, %v506_v10  ;;  %332 = vmatprep.subr.mxu0 %v506_v10  ;;  %334 = vmatprep.mubr.msk.f32.mxu0 %vm507_vm2, %v506_v10  ;;  %v376_v18 = vpack.c.bf16 %v198_v17, %v197_v14  ;;  %v200_v20 = vld [vmem:[#allocation8 + $0x28] sm:$0xff]  ;;  %v201_v22 = vld [vmem:[#allocation8 + $0x30] sm:$0xff] }
  0x3a   :  { %v78_v8 = vadd.f32 %v77_v5, %v76_v3  ;;  %v83_v9 = vadd.f32 %v82_v7, %v81_v6  ;;  %333 = vmatpush3.msk.msra.mxu0 %vm75_vm0, %v109_v11  ;;  %369 = vmatprep.mubr.msk.f32.mxu1 %vm507_vm2, %v506_v10  ;;  %v379_v21 = vpack.c.bf16 %v200_v20, %v199_v19  ;;  %v202_v23 = vld [vmem:[#allocation8 + $0x38] sm:$0xff]  ;;  %v203_v25 = vld [vmem:[#allocation8 + $0x40] sm:$0xff]  ;;  %v204_v26 = vld [vmem:[#allocation8 + $0x48] sm:$0xff]  ;;  %v89_v35 = vand.u32 127, %v88_v34  ;;  %s509_s7 = smov [#allocation9]  }
  0x3b   :  { %372 = vmatprep.subr.bf16.mxu1 %v508_v15  ;;  %v382_v24 = vpack.c.bf16 %v202_v23, %v201_v22  ;;  %v385_v27 = vpack.c.bf16 %v204_v26, %v203_v25  ;;  %v205_v28 = vld [vmem:[#allocation8 + $0x50] sm:$0xff]  ;;  %v206_v29 = vld [vmem:[#allocation8 + $0x58] sm:$0xff]  ;;  %v207_v31 = vld [vmem:[#allocation8 + $0x60] sm:$0xff]  ;;  %v91_v36 = vshrl.u32 %v88_v34, 7  ;;  %vm98_vm3 = vcmask 1041409   ;;  %s299_s8 = sshll.u32 %s509_s7, 4  ;;  %s300_s8 = int_to_ptr.vmem [resolvable:$true] %s299_s8 }
  0x3c   :  { %79 = vadd.xlane.f32.xlu0 %v78_v8  ;;  %374 = vmatpush3.bf16.msra.mxu1 %v373_v16  ;;  %v388_v30 = vpack.c.bf16 %v206_v29, %v205_v28  ;;  %v208_v32 = vld [vmem:[#allocation8 + $0x68] sm:$0xff]  ;;  %vm117_vm4 = vcmask 31744   ;;  %v209_v47 = vld [vmem:[#allocation8 + $0x70] sm:$0xff]  ;;  %v210_v48 = vld [vmem:[#allocation8 + $0x78] sm:$0xff]  ;;  %p478_p11 = scmp.lt.s32.totalorder %s300_s8, %s300_s8 }
  0x3d   :  { %375 = vmatprep.subr.bf16.mxu1 %v508_v15  ;;  %v391_v33 = vpack.c.bf16 %v208_v32, %v207_v31  ;;  %v92_v38 = vsub.s32 %v89_v35, %v91_v36  ;;  %v394_v49 = vpack.c.bf16 %v210_v48, %v209_v47  ;;  %v309_v50 = vld [vmem:[%s610_s2] ss:$0 sm:$0xff]  ;;  %s473_s2 = scalar_lea.vmem %s300_s8, 32 }
  0x3e   :  { %v312_v55 = vld [vmem:[%s612_s4] ss:$0 sm:$0xff]  ;;  %p474_p10 = scmp.ne.s32.totalorder %s300_s8, %s473_s2  ;;  %p479_p12 = scmp.lt.s32.totalorder %s473_s2, %s473_s2 }
  0x40   :  { %84 = vadd.xlane.f32.xlu0 %v83_v9  ;;  %377 = vmatpush3.bf16.msra.mxu1 %v376_v18  ;;  %v68_v42 = vld [vmem:[#allocation2] sm:$0x3]  ;;  %p480_p13 = por %p479_p12, %p478_p11 }
  0x41   :  { %378 = vmatprep.subr.bf16.mxu1 %v508_v15 }
  0x42   :  { %p481_p0 = pnand %p480_p13, %p474_p10 }
  0x44   :  { %380 = vmatpush3.bf16.msra.mxu1 %v379_v21 }
  0x45   :  { %381 = vmatprep.subr.bf16.mxu1 %v508_v15 }
  0x48   :  { %383 = vmatpush3.bf16.msra.mxu1 %v382_v24 }
  0x49   :  { %384 = vmatprep.subr.bf16.mxu1 %v508_v15 }
  0x4c   :  { %386 = vmatpush3.bf16.msra.mxu1 %v385_v27 }
  0x4d   :  { %387 = vmatprep.subr.bf16.mxu1 %v508_v15 }
  0x50   :  { %389 = vmatpush3.bf16.msra.mxu1 %v388_v30 }
  0x51   :  { %390 = vmatprep.subr.bf16.mxu1 %v508_v15 }
  0x54   :  { %392 = vmatpush3.bf16.msra.mxu1 %v391_v33 }
  0x55   :  { %393 = vmatprep.subr.bf16.mxu1 %v508_v15 }
  0x58   :  { %395 = vmatpush3.bf16.msra.mxu1 %v394_v49 }
  0xc9   :  { %v80_v37 = vpop.xlane.xlu0 %79 }
  0xca   :  { %v93_v40 = vrot.slane %v80_v37, %v92_v38 }
  0xcd   :  { %v85_v39 = vpop.xlane.xlu0 %84 }
  0xce   :  { %v97_v41 = vrot.slane %v85_v39, %v92_v38 }
  0xd0   :  { %v99_v43 = vsel %vm98_vm3, %v97_v41, %v93_v40 }
  0xd1   :  { %v101_v44 = vadd.f32 %v99_v43, %v68_v42 }
  0xd3   :  { %103 = vst.msk [vmem:[#allocation2] sm:$0x3] %vm64_vm1, %v101_v44 }
  0xda   :  { %v107_v45 = vld [vmem:[#allocation2] sm:$0x3] }
  0xdb   :  { %v108_v46 = vmul.f32 0.00390625, %v107_v45 }
  0xdd   :  { %335 = vmatmul.mubr.msk.f32.vlgmr.msra.gmra.mrb[0].mxu0 %vm117_vm4, %v108_v46 }
 0x1b0   :  { %v190_v51 = vpop.f32.mrb[0].mxu0 }
 0x1b1   :  { %v191_v52 = vadd.f32 %v309_v50, %v190_v51  ;;  %v336_v53 = vpop.f32.mrb[1].mxu0 }
 0x1b3   :  { %v194_v54 = vmax.f32 %v191_v52, 0.0 }
 0x1b5   :  { %370 = vmatmul.mubr.f32.vlgmr.msra.gmra.mrb[0].mxu1 %v194_v54 }
 0x288   :  { %v284_v56 = vpop.f32.mrb[0].mxu1 }
 0x289   :  { %v285_v57 = vadd.f32 %v312_v55, %v284_v56  ;;  %v371_v58 = vpop.f32.mrb[1].mxu1 }
 0x28b   :  { %v288_v59 = vmul.f32 0.16666667, %v285_v57 }
 0x28d   :  { %v289_v60 = vadd.f32 0.5, %v288_v59 }
 0x28f   :  { %v290_v61 = vmax.f32 %v289_v60, 0.0 }
 0x291   :  { %v291_v62 = vmin.f32 %v290_v61, 1.0 }
 0x293   :  { %292 = vst [vmem:[#allocation9] sm:$0x3] %v291_v62 }
 0x294   :  { %484 = shalt.err (!%p481_p0)
}
 0x295   :  { %s485_s10 = scalar_lea.hbm %s613_s5, 32 }
 0x296   :  { %p486_p1 = scmp.ne.s32.totalorder %s613_s5, %s485_s10  ;;  %p489_p2 = scmp.lt.u32.totalorder %s485_s10, %s613_s5 }
 0x298   :  { %p491_p3 = pnand %p489_p2, %p486_p1 }
 0x29a   :  { %494 = shalt.err (!%p491_p3)
}
 0x29b   :  { %302 = dma.vmem_to_hbm [thread:$0]  %s300_s8, 32, %s613_s5, [#allocation5]  }
 0x29c   :  { %499 = dma.done.wait [#allocation5], 32  }
 0x29d   :  { %500 = vsyncadd [#allocation5], 4294967264 }
 0x29e   :  { %306 = vsyncpa [#allocation4], 1 }
 0x29f   :  { %307 = vsyncpa [#allocation7], 1 }
 0x2a0   :  { %308 = vsyncpa [#allocation5], 1 }

</bundles_post_ra>
